<compile_context>
chip_gen: v7x
topology: tpu7x:2x2x1
jax: 0.10.0
libtpu: 0.0.40
codegen_flags: <defaults>
</compile_context>

<pallas_src>
import functools

import jax
import jax.numpy as jnp
from jax import lax
from jax.experimental import pallas as pl
from jax.experimental.pallas import tpu as pltpu


def _round_up(x, m):
    return (x + m - 1) // m * m


def _basic_block_kernel(*refs, norm, d_valid, eps, matmul_dtype):
    # refs (norm=False): x_ref (tm, dim_in), w_ref (dout_pad, dim_in),
    #                    b_ref (1, dout_pad), o_ref (tm, dout_pad)
    # refs (norm=True):  ... plus g_ref, beta_ref (1, dout_pad) before o_ref.
    if norm:
        x_ref, w_ref, b_ref, g_ref, beta_ref, o_ref = refs
    else:
        x_ref, w_ref, b_ref, o_ref = refs

    x = x_ref[...]
    w = w_ref[...]                       # PyTorch layout [dim_out_pad, dim_in]
    if matmul_dtype is not None:
        x = x.astype(matmul_dtype)
        w = w.astype(matmul_dtype)

    # out[m, o] = sum_k x[m, k] * w[o, k]  (transpose folded into the contraction)
    out = lax.dot_general(
        x, w,
        dimension_numbers=(((1,), (1,)), ((), ())),
        preferred_element_type=jnp.float32,
    ) + b_ref[...]

    if norm:
        # Padded output lanes are exactly zero (zero weight rows + zero bias),
        # so unmasked sums over the padded lane axis equal sums over the valid
        # lanes; divide by the *valid* width.  One-pass variance.
        inv_d = 1.0 / d_valid
        mean = jnp.sum(out, axis=-1, keepdims=True) * inv_d
        mean_sq = jnp.sum(out * out, axis=-1, keepdims=True) * inv_d
        var = jnp.maximum(mean_sq - mean * mean, 0.0)
        out = (out - mean) * lax.rsqrt(var + eps)
        out = out * g_ref[...] + beta_ref[...]

    o_ref[...] = jnp.maximum(out, 0.0).astype(o_ref.dtype)


def basic_block_forward(x, weight, bias, ln_gamma=None, ln_beta=None, *,
                        norm=False, eps=1e-5, tm=1024, matmul_dtype=None,
                        out_dtype=None):
    """x: [N, dim_in]; weight: [dim_out, dim_in] (PyTorch layout); bias: [dim_out]."""
    n, dim_in = x.shape
    dim_out, dim_in_w = weight.shape
    assert dim_in_w == dim_in
    out_dtype = out_dtype or x.dtype

    # Row tile: large (pipeline-efficient) but clamped for small / ragged batches.
    tm_eff = min(_round_up(tm, 8), _round_up(n, 8))
    n_pad = _round_up(n, tm_eff)

    # Lane-dense output: pad dim_out to a multiple of 128 (full-width stores).
    dout_pad = _round_up(dim_out, 128)

    x_p = x if n_pad == n else jnp.pad(x, ((0, n_pad - n), (0, 0)))
    w_p = weight if dout_pad == dim_out else jnp.pad(
        weight, ((0, dout_pad - dim_out), (0, 0)))
    b = bias if bias is not None else jnp.zeros((dim_out,), x.dtype)
    b_p = jnp.pad(b, (0, dout_pad - dim_out)).reshape(1, dout_pad)

    args = [x_p, w_p, b_p]
    in_specs = [
        pl.BlockSpec((tm_eff, dim_in), lambda i: (i, 0)),
        pl.BlockSpec((dout_pad, dim_in), lambda i: (0, 0)),
        pl.BlockSpec((1, dout_pad), lambda i: (0, 0)),
    ]
    if norm:
        g_p = jnp.pad(ln_gamma, (0, dout_pad - dim_out)).reshape(1, dout_pad)
        beta_p = jnp.pad(ln_beta, (0, dout_pad - dim_out)).reshape(1, dout_pad)
        args += [g_p, beta_p]
        in_specs += [
            pl.BlockSpec((1, dout_pad), lambda i: (0, 0)),
            pl.BlockSpec((1, dout_pad), lambda i: (0, 0)),
        ]

    kernel = functools.partial(
        _basic_block_kernel, norm=norm, d_valid=dim_out, eps=eps,
        matmul_dtype=matmul_dtype)

    out = pl.pallas_call(
        kernel,
        out_shape=jax.ShapeDtypeStruct((n_pad, dout_pad), out_dtype),
        grid_spec=pltpu.PrefetchScalarGridSpec(
            num_scalar_prefetch=0,
            grid=(n_pad // tm_eff,),
            in_specs=in_specs,
            out_specs=pl.BlockSpec((tm_eff, dout_pad), lambda i: (i, 0)),
        ),
        compiler_params=pltpu.CompilerParams(
            dimension_semantics=("parallel",),
            vmem_limit_bytes=64 << 20,
        ),
    )(*args)

    return out[:n, :dim_out]


def basic_block_ref(x, weight, bias, ln_gamma, ln_beta, *, norm=False, eps=1e-5):
    out = x @ weight.T + bias
    if norm:
        mean = out.mean(-1, keepdims=True)
        var = ((out - mean) ** 2).mean(-1, keepdims=True)
        out = (out - mean) / jnp.sqrt(var + eps) * ln_gamma + ln_beta
    return jnp.maximum(out, 0.0)


if __name__ == "__main__":
    key = jax.random.PRNGKey(0)
    dim_in, dim_out, n = 32, 64, 16

    k_x, k_w, k_b = jax.random.split(key, 3)
    x = jax.random.normal(k_x, (n, dim_in), dtype=jnp.float32)

    # Deterministic parameter init (nn.Linear-style uniform bounds).
    bound = 1.0 / jnp.sqrt(dim_in)
    weight = jax.random.uniform(k_w, (dim_out, dim_in), jnp.float32, -bound, bound)
    bias = jax.random.uniform(k_b, (dim_out,), jnp.float32, -bound, bound)
    ln_gamma = jnp.ones((dim_out,), jnp.float32)   # LayerNorm default init
    ln_beta = jnp.zeros((dim_out,), jnp.float32)

    # norm=False (default BasicBlock): Linear -> Identity -> ReLU
    out = basic_block_forward(x, weight, bias, norm=False)
    jax.block_until_ready(out)
    ref = basic_block_ref(x, weight, bias, ln_gamma, ln_beta, norm=False)
    assert out.shape == ref.shape
    assert jnp.allclose(out, ref, atol=1e-5, rtol=1e-5)

    # norm=True variant: Linear (bias zeroed per __init__) -> LayerNorm -> ReLU
    zero_bias = jnp.zeros_like(bias)
    out_ln = basic_block_forward(x, weight, zero_bias, ln_gamma, ln_beta, norm=True)
    jax.block_until_ready(out_ln)
    ref_ln = basic_block_ref(x, weight, zero_bias, ln_gamma, ln_beta, norm=True)
    assert jnp.allclose(out_ln, ref_ln, atol=1e-4, rtol=1e-4)

    # Ragged batch (not a multiple of 8) exercises the pad-and-slice path.
    x_rag = jax.random.normal(k_x, (13, dim_in), dtype=jnp.float32)
    out_rag = basic_block_forward(x_rag, weight, bias, norm=False)
    jax.block_until_ready(out_rag)
    ref_rag = basic_block_ref(x_rag, weight, bias, ln_gamma, ln_beta, norm=False)
    assert out_rag.shape == (13, dim_out)
    assert jnp.allclose(out_rag, ref_rag, atol=1e-5, rtol=1e-5)

    # Optional bf16 MXU operands (v6e/v7x), f32 accumulate + f32 epilogue.
    out_bf16 = basic_block_forward(x, weight, bias, norm=False,
                                   matmul_dtype=jnp.bfloat16)
    jax.block_until_ready(out_bf16)
    assert jnp.allclose(out_bf16, ref, atol=5e-2, rtol=5e-2)

    print("KERNEL_OK")
</pallas_src>

<mosaic_0001>
module attributes {stable_mosaic.version = 11 : i64} {
  func.func @_basic_block_kernel(%arg0: i32, %arg1: memref<16x32xf32, #tpu.memory_space<vmem>>, %arg2: memref<128x32xf32, #tpu.memory_space<vmem>>, %arg3: memref<1x128xf32, #tpu.memory_space<vmem>>, %arg4: memref<16x128xf32, #tpu.memory_space<vmem>>) attributes {dimension_semantics = [#tpu.dimension_semantics<parallel>], iteration_bounds = array<i64: 1>, scalar_prefetch = 0 : i64, scratch_operands = 0 : i64, tpu.core_type = #tpu.core_type<tc>, window_params = [{transform_indices = @transform_0, window_bounds = array<i64: 16, 32>}, {pipeline_mode = #tpu.pipeline_mode<synchronous>, transform_indices = @transform_1, window_bounds = array<i64: 128, 32>}, {pipeline_mode = #tpu.pipeline_mode<synchronous>, transform_indices = @transform_2, window_bounds = array<i64: 1, 128>}, {transform_indices = @transform_3, window_bounds = array<i64: 16, 128>}]} {
    %c0 = arith.constant 0 : index
    %c0_0 = arith.constant 0 : index
    %0 = vector.load %arg1[%c0, %c0_0] : memref<16x32xf32, #tpu.memory_space<vmem>>, vector<16x32xf32>
    %c0_1 = arith.constant 0 : index
    %c0_2 = arith.constant 0 : index
    %1 = vector.load %arg2[%c0_1, %c0_2] : memref<128x32xf32, #tpu.memory_space<vmem>>, vector<128x32xf32>
    %cst = arith.constant dense<0.000000e+00> : vector<16x128xf32>
    %2 = tpu.matmul %0, %1, %cst {dimension_numbers = #tpu.dot_dimension_numbers<[1], [1], [0], [0], [0, 0, 1, 0], [], []>} : vector<16x32xf32>, vector<128x32xf32>, vector<16x128xf32> -> vector<16x128xf32>
    %c0_3 = arith.constant 0 : index
    %c0_4 = arith.constant 0 : index
    %3 = vector.load %arg3[%c0_3, %c0_4] : memref<1x128xf32, #tpu.memory_space<vmem>>, vector<1x128xf32>
    %4 = vector.broadcast %3 : vector<1x128xf32> to vector<16x128xf32>
    %5 = arith.addf %2, %4 : vector<16x128xf32>
    %cst_5 = arith.constant 0.000000e+00 : f32
    %6 = vector.broadcast %cst_5 : f32 to vector<16x128xf32>
    %7 = arith.maximumf %5, %6 : vector<16x128xf32>
    %c0_6 = arith.constant 0 : index
    %c0_7 = arith.constant 0 : index
    %8 = vector.load %arg4[%c0_6, %c0_7] : memref<16x128xf32, #tpu.memory_space<vmem>>, vector<16x128xf32>
    tpu.vector_store %arg4[%c0_6, %c0_7], %7 {strides = array<i32>} : memref<16x128xf32, #tpu.memory_space<vmem>>, vector<16x128xf32>,
    return
  }
  func.func @transform_0(%arg0: i32) -> (i32, i32) {
    %c0_i32 = arith.constant 0 : i32
    %c0_i32_0 = arith.constant 0 : i32
    return %arg0, %c0_i32 : i32, i32
  }
  func.func @transform_1(%arg0: i32) -> (i32, i32) {
    %c0_i32 = arith.constant 0 : i32
    %c0_i32_0 = arith.constant 0 : i32
    %c0_i32_1 = arith.constant 0 : i32
    return %c0_i32, %c0_i32_0 : i32, i32
  }
  func.func @transform_2(%arg0: i32) -> (i32, i32) {
    %c0_i32 = arith.constant 0 : i32
    %c0_i32_0 = arith.constant 0 : i32
    %c0_i32_1 = arith.constant 0 : i32
    return %c0_i32, %c0_i32_0 : i32, i32
  }
  func.func @transform_3(%arg0: i32) -> (i32, i32) {
    %c0_i32 = arith.constant 0 : i32
    %c0_i32_0 = arith.constant 0 : i32
    return %arg0, %c0_i32 : i32, i32
  }
}

</mosaic_0001>

<bundles_post_ra>
// kernel: tpu_custom_call.1
= control target key start
LH: loop header
LB: loop body
LE: loop exit
PB: predicated region body
PF: predicated region fallthrough
CT: control target
= control target key end

     0   :  { %8 = vsyncpa [#allocation3], 0  ;;  %s581_s0 = inlined_call_operand.hbm [shape: f32[16,32], index: 0, kind: input, shape index: {}]   ;;  %s582_s1 = inlined_call_operand.hbm [shape: f32[128,32], index: 1, kind: input, shape index: {}]   ;;  %s583_s2 = inlined_call_operand.hbm [shape: f32[1,128], index: 2, kind: input, shape index: {}]   ;;  %s584_s3 = inlined_call_operand.hbm [shape: f32[16,128], index: 3, kind: output, shape index: {}]  }
   0x1   :  { %9 = vsyncpa [#allocation6], 0 }
   0x2   :  { %10 = vsyncpa [#allocation4], 0  ;;  %s451_s12 = smov [#allocation5]   ;;  %s452_s14 = smov [#allocation2]  }
   0x3   :  { %s28_s13 = sshll.u32 %s451_s12, 4  ;;  %s16_s15 = sshll.u32 %s452_s14, 4  ;;  %s29_s13 = int_to_ptr.vmem [resolvable:$true] %s28_s13  ;;  %s477_s15 = int_to_ptr.vmem [resolvable:$true] %s16_s15 }
   0x4   :  { %s357_s18 = scalar_lea.hbm %s582_s1, 2048 }
   0x5   :  { %p358_p0 = scmp.ne.s32.totalorder %s582_s1, %s357_s18  ;;  %p361_p1 = scmp.lt.u32.totalorder %s357_s18, %s582_s1 }
   0x7   :  { %p363_p2 = pnand %p361_p1, %p358_p0 }
   0x9   :  { %366 = shalt.err (!%p363_p2)
}
   0xa   :  { %s367_s23 = scalar_lea.vmem %s29_s13, 2048  ;;  %p372_p4 = scmp.lt.s32.totalorder %s29_s13, %s29_s13 }
   0xb   :  { %p368_p3 = scmp.ne.s32.totalorder %s29_s13, %s367_s23  ;;  %p373_p5 = scmp.lt.s32.totalorder %s367_s23, %s367_s23 }
   0xd   :  { %p374_p6 = por %p373_p5, %p372_p4 }
   0xf   :  { %p375_p7 = pnand %p374_p6, %p368_p3 }
  0x11   :  { %378 = shalt.err (!%p375_p7)
}
  0x12   :  { %s453_s24 = smov 128   ;;  %s454_s25 = smov 8  }
  0x13   :  { %34 = dma.hbm_to_vmem [thread:$0]  %s582_s1, 2048, %s29_s13, [#allocation6], %s453_s24, %s453_s24, %s454_s25  }
  0x14   :  { %s379_s30 = scalar_lea.hbm %s581_s0, 256 }
  0x15   :  { %p380_p8 = scmp.ne.s32.totalorder %s581_s0, %s379_s30  ;;  %p383_p9 = scmp.lt.u32.totalorder %s379_s30, %s581_s0 }
  0x17   :  { %p385_p10 = pnand %p383_p9, %p380_p8 }
  0x19   :  { %388 = shalt.err (!%p385_p10)
}
  0x1a   :  { %s389_s8 = scalar_lea.vmem %s477_s15, 256  ;;  %p394_p12 = scmp.lt.s32.totalorder %s477_s15, %s477_s15 }
  0x1b   :  { %p390_p11 = scmp.ne.s32.totalorder %s477_s15, %s389_s8  ;;  %p395_p13 = scmp.lt.s32.totalorder %s389_s8, %s389_s8 }
  0x1d   :  { %p396_p0 = por %p395_p13, %p394_p12 }
  0x1f   :  { %p397_p1 = pnand %p396_p0, %p390_p11 }
  0x21   :  { %400 = shalt.err (!%p397_p1)
}
  0x22   :  { %22 = dma.hbm_to_vmem [thread:$0]  %s581_s0, 256, %s477_s15, [#allocation3], %s453_s24, %s453_s24, %s454_s25  }
  0x23   :  { %s455_s10 = smov [#allocation7]   ;;  %s401_s14 = scalar_lea.hbm %s583_s2, 16 }
  0x24   :  { %s41_s11 = sshll.u32 %s455_s10, 4  ;;  %p402_p2 = scmp.ne.s32.totalorder %s583_s2, %s401_s14  ;;  %s42_s11 = int_to_ptr.vmem [resolvable:$true] %s41_s11 }
  0x25   :  { %p405_p3 = scmp.lt.u32.totalorder %s401_s14, %s583_s2 }
  0x27   :  { %p407_p4 = pnand %p405_p3, %p402_p2 }
  0x29   :  { %410 = shalt.err (!%p407_p4)
}
  0x2a   :  { %s411_s20 = scalar_lea.vmem %s42_s11, 16  ;;  %s415_s0 = scalar_lea.vmem %s42_s11, 32 }
  0x2b   :  { %p412_p5 = scmp.ne.s32.totalorder %s42_s11, %s411_s20  ;;  %p416_p6 = scmp.lt.s32.totalorder %s42_s11, %s42_s11 }
  0x2c   :  { %p417_p7 = scmp.lt.s32.totalorder %s415_s0, %s411_s20 }
  0x2e   :  { %p418_p8 = por %p417_p7, %p416_p6 }
  0x30   :  { %p419_p9 = pnand %p418_p8, %p412_p5 }
  0x32   :  { %422 = shalt.err (!%p419_p9)
}
  0x33   :  { %44 = dma.hbm_to_vmem [thread:$0]  %s583_s2, 16, %s42_s11, [#allocation6]  }
  0x34   :  { %445 = dma.done.wait [#allocation3], 256  }
  0x35   :  { %446 = vsyncadd [#allocation3], 4294967040 }
  0x36   :  { %447 = dma.done.wait [#allocation6], 2064  }
  0x37   :  { %448 = vsyncadd [#allocation6], 4294965232  ;;  %vm79_vm0 = vcmask 261120   ;;  %v56_v1 = vld [vmem:[#allocation5] sm:$0xff]  ;;  %v57_v2 = vld [vmem:[#allocation5 + $0x8] sm:$0xff]  ;;  %s456_s2 = smov [#allocation8]  }
  0x38   :  { %vm528_vm1 = vmpackc.low %vm79_vm0, %vm79_vm0  ;;  %v58_v3 = vld [vmem:[#allocation5 + $0x10] sm:$0xff]  ;;  %v303_v4 = vpack.c.bf16 %v57_v2, %v56_v1  ;;  %v59_v5 = vld [vmem:[#allocation5 + $0x18] sm:$0xff]  ;;  %s218_s22 = sshll.u32 %s456_s2, 4  ;;  %s219_s22 = int_to_ptr.vmem [resolvable:$true] %s218_s22 }
  0x39   :  { %v309_v6 = vpack.c.bf16 %v59_v5, %v58_v3  ;;  %v54_v7 = vld [vmem:[#allocation2] sm:$0xff]  ;;  %v60_v8 = vld [vmem:[#allocation5 + $0x20] sm:$0xff]  ;;  %v61_v9 = vld [vmem:[#allocation5 + $0x28] sm:$0xff]  ;;  %s423_s23 = scalar_lea.vmem %s219_s22, 256  ;;  %p428_p11 = scmp.lt.s32.totalorder %s219_s22, %s219_s22 }
  0x3a   :  { %305 = vmatprep.subr.msk.bf16.mxu0 %vm528_vm1, %v303_v4  ;;  %300 = vmatprep.mubr.msk.f32.mxu0 %vm79_vm0, %v54_v7  ;;  %v315_v10 = vpack.c.bf16 %v61_v9, %v60_v8  ;;  %v62_v11 = vld [vmem:[#allocation5 + $0x30] sm:$0xff]  ;;  %v63_v12 = vld [vmem:[#allocation5 + $0x38] sm:$0xff]  ;;  %v64_v14 = vld [vmem:[#allocation5 + $0x40] sm:$0xff]  ;;  %p424_p10 = scmp.ne.s32.totalorder %s219_s22, %s423_s23  ;;  %p429_p12 = scmp.lt.s32.totalorder %s423_s23, %s423_s23 }
  0x3b   :  { %308 = vmatpush3.bf16.xpose.msk.msra.mxu0 %vm528_vm1, %v303_v4  ;;  %v321_v13 = vpack.c.bf16 %v63_v12, %v62_v11  ;;  %v65_v15 = vld [vmem:[#allocation5 + $0x48] sm:$0xff]  ;;  %v66_v17 = vld [vmem:[#allocation5 + $0x50] sm:$0xff]  ;;  %v67_v18 = vld [vmem:[#allocation5 + $0x58] sm:$0xff] }
  0x3c   :  { %311 = vmatprep.subr.msk.bf16.mxu0 %vm528_vm1, %v309_v6  ;;  %v327_v16 = vpack.c.bf16 %v65_v15, %v64_v14  ;;  %v333_v19 = vpack.c.bf16 %v67_v18, %v66_v17  ;;  %v68_v20 = vld [vmem:[#allocation5 + $0x60] sm:$0xff]  ;;  %v69_v21 = vld [vmem:[#allocation5 + $0x68] sm:$0xff]  ;;  %v70_v23 = vld [vmem:[#allocation5 + $0x70] sm:$0xff]  ;;  %p430_p13 = por %p429_p12, %p428_p11 }
  0x3d   :  { %v339_v22 = vpack.c.bf16 %v69_v21, %v68_v20  ;;  %v71_v24 = vld [vmem:[#allocation5 + $0x78] sm:$0xff]  ;;  %v231_v27 = vld [vmem:[#allocation7] ss:$0 sm:$0xff] }
  0x3e   :  { %v345_v25 = vpack.c.bf16 %v71_v24, %v70_v23  ;;  %v55_v26 = vld [vmem:[#allocation2 + $0x8] sm:$0xff]  ;;  %p431_p0 = pnand %p430_p13, %p424_p10 }
  0x43   :  { %314 = vmatpush3.bf16.xpose.msk.msra.mxu0 %vm528_vm1, %v309_v6 }
  0x44   :  { %317 = vmatprep.subr.msk.bf16.mxu0 %vm528_vm1, %v315_v10 }
  0x4b   :  { %320 = vmatpush3.bf16.xpose.msk.msra.mxu0 %vm528_vm1, %v315_v10 }
  0x4c   :  { %323 = vmatprep.subr.msk.bf16.mxu0 %vm528_vm1, %v321_v13 }
  0x53   :  { %326 = vmatpush3.bf16.xpose.msk.msra.mxu0 %vm528_vm1, %v321_v13 }
  0x54   :  { %329 = vmatprep.subr.msk.bf16.mxu0 %vm528_vm1, %v327_v16 }
  0x5b   :  { %332 = vmatpush3.bf16.xpose.msk.msra.mxu0 %vm528_vm1, %v327_v16 }
  0x5c   :  { %335 = vmatprep.subr.msk.bf16.mxu0 %vm528_vm1, %v333_v19 }
  0x63   :  { %338 = vmatpush3.bf16.xpose.msk.msra.mxu0 %vm528_vm1, %v333_v19 }
  0x64   :  { %341 = vmatprep.subr.msk.bf16.mxu0 %vm528_vm1, %v339_v22 }
  0x6b   :  { %344 = vmatpush3.bf16.xpose.msk.msra.mxu0 %vm528_vm1, %v339_v22 }
  0x6c   :  { %347 = vmatprep.subr.msk.bf16.mxu0 %vm528_vm1, %v345_v25 }
  0x73   :  { %350 = vmatpush3.bf16.xpose.msk.msra.mxu0 %vm528_vm1, %v345_v25 }
  0x7a   :  { %301 = vmatmul.mubr.msk.f32.vlgmr.msra.gmra.mrb[0].mxu0 %vm79_vm0, %v55_v26 }
 0x14d   :  { %v302_v28 = vpop.f32.mrb[0].mxu0 }
 0x14e   :  { %v206_v29 = vadd.f32 %v302_v28, %v231_v27  ;;  %v200_v30 = vpop.f32.mrb[1].mxu0 }
 0x14f   :  { %v201_v31 = vadd.f32 %v231_v27, %v200_v30 }
 0x150   :  { %v210_v32 = vmax.f32 %v206_v29, 0.0 }
 0x151   :  { %v209_v33 = vmax.f32 %v201_v31, 0.0 }
 0x152   :  { %212 = vst [vmem:[#allocation8 + $0x8] sm:$0xff] %v210_v32 }
 0x153   :  { %211 = vst [vmem:[#allocation8] sm:$0xff] %v209_v33 }
 0x154   :  { %434 = shalt.err (!%p431_p0)
}
 0x155   :  { %s435_s28 = scalar_lea.hbm %s584_s3, 256 }
 0x156   :  { %p436_p1 = scmp.ne.s32.totalorder %s584_s3, %s435_s28  ;;  %p439_p2 = scmp.lt.u32.totalorder %s435_s28, %s584_s3 }
 0x158   :  { %p441_p3 = pnand %p439_p2, %p436_p1 }
 0x15a   :  { %444 = shalt.err (!%p441_p3)
}
 0x15b   :  { %224 = dma.vmem_to_hbm [thread:$0]  %s219_s22, 256, %s584_s3, [#allocation4], %s453_s24, %s453_s24, %s454_s25  }
 0x15c   :  { %449 = dma.done.wait [#allocation4], 256  }
 0x15d   :  { %450 = vsyncadd [#allocation4], 4294967040 }
 0x15e   :  { %228 = vsyncpa [#allocation3], 1 }
 0x15f   :  { %229 = vsyncpa [#allocation6], 1 }
 0x160   :  { %230 = vsyncpa [#allocation4], 1 }

</bundles_post_ra>
